<compile_context>
chip_gen: v7x
topology: tpu7x:2x2x1
jax: 0.10.0
libtpu: 0.0.40
codegen_flags: <defaults>
</compile_context>

<pallas_src>
import jax
import jax.numpy as jnp
from jax import lax
from jax.experimental import pallas as pl
from jax.experimental.pallas import tpu as pltpu


def _as_2d(x):
    if x.ndim == 0:
        return x.reshape(1, 1)
    if x.ndim == 1:
        return x.reshape(1, -1)
    if x.ndim == 2:
        return x
    return x.reshape(-1, x.shape[-1])


def _bce_loglik(p, t):
    # t*log(p) + (1-t)*log(1-p), log terms clamped at -100 (PyTorch BCE rule).
    log_p = jnp.maximum(jnp.log(p), -100.0)
    log_1mp = jnp.maximum(jnp.log1p(-p), -100.0)
    return t * log_p + (1.0 - t) * log_1mp


def _kl_terms(mu, log_var):
    return -1.0 - log_var + mu * mu + jnp.exp(log_var)


def _pallas_masked_sum(elem_fn, arrays, fill_values, *,
                       max_tile_rows=2048,
                       tile_bytes_cap=4 * 1024 * 1024,   # per input per buffer (v7x-safe)
                       n_outer_target=2,                 # v7x: 2 TensorCores
                       vmem_limit_bytes=32 * 1024 * 1024):
    """sum(elem_fn(*arrays)) over all elements, computed with a tiled Pallas kernel."""
    arrays = [_as_2d(a) for a in arrays]
    n_rows, n_cols = arrays[0].shape
    for a in arrays:
        assert a.shape == (n_rows, n_cols), "reduction inputs must share a shape"

    # Pad only sub-sublane-group inputs so a block never exceeds the array dim.
    if n_rows < 8:
        arrays = [jnp.pad(a, ((0, 8 - n_rows), (0, 0))) for a in arrays]
    phys_rows = arrays[0].shape[0]

    # Tile sizing: as many rows as fit the per-input byte budget, multiple of 8.
    rows_fit = max(8, (tile_bytes_cap // (4 * n_cols)) // 8 * 8)
    tile_rows = int(min(max_tile_rows, rows_fit, (phys_rows // 8) * 8))

    n_blocks = (phys_rows + tile_rows - 1) // tile_rows
    n_outer = int(min(n_outer_target, n_blocks))
    n_inner = (n_blocks + n_outer - 1) // n_outer
    n_in = len(arrays)

    def in_index_map(o, i):
        # Padded grid cells (b >= n_blocks) re-read a valid block; their
        # contribution is masked to zero inside the kernel body.
        b = jnp.minimum(o * n_inner + i, n_blocks - 1)
        return (b, 0)

    def kernel(*refs):
        in_refs = refs[:n_in]
        out_ref = refs[n_in]
        acc_ref = refs[n_in + 1]

        o = pl.program_id(0)
        i = pl.program_id(1)

        @pl.when(i == 0)
        def _():
            acc_ref[...] = jnp.zeros_like(acc_ref)

        b = o * n_inner + i
        b_clamped = jnp.minimum(b, n_blocks - 1)
        row0 = b_clamped * tile_rows
        rows = row0 + lax.broadcasted_iota(jnp.int32, (tile_rows, n_cols), 0)
        valid = (rows < n_rows) & (b < n_blocks)

        # In-kernel cast; OOB / padded lanes replaced by a safe fill before math.
        vals = [jnp.where(valid, r[...].astype(jnp.float32), fv)
                for r, fv in zip(in_refs, fill_values)]
        contrib = jnp.where(valid, elem_fn(*vals), 0.0)

        # Reduce only to an (8, n_cols) slab: pure VPU adds every grid step;
        # the expensive full reduce happens once, outside the kernel.
        acc_ref[...] += contrib.reshape(tile_rows // 8, 8, n_cols).sum(axis=0)

        @pl.when(i == pl.num_programs(1) - 1)
        def _():
            out_ref[...] = acc_ref[...]

    partials = pl.pallas_call(
        kernel,
        out_shape=jax.ShapeDtypeStruct((n_outer * 8, n_cols), jnp.float32),
        grid_spec=pltpu.PrefetchScalarGridSpec(
            num_scalar_prefetch=0,
            grid=(n_outer, n_inner),
            in_specs=[pl.BlockSpec((tile_rows, n_cols), in_index_map)
                      for _ in range(n_in)],
            out_specs=pl.BlockSpec((8, n_cols), lambda o, i: (o, 0)),
            scratch_shapes=[pltpu.VMEM((8, n_cols), jnp.float32)],
        ),
        compiler_params=pltpu.CompilerParams(
            dimension_semantics=("parallel", "arbitrary"),
            vmem_limit_bytes=vmem_limit_bytes,
        ),
    )(*arrays)
    return jnp.sum(partials)


def reward_calculator_vae_umap(means, log_vars, points, low_dim_similarity,
                               high_dim_similarity, *, max_tile_rows=2048):
    """Matches RewardCalculatorVAE_UMAP.forward -> {'encoder_reward': scalar}."""
    x_a, _ = points  # unpacked for interface parity; not used by the reward math
    del x_a

    low2d = _as_2d(low_dim_similarity)
    n_sim = low2d.shape[0] * low2d.shape[1]

    bce_ll_sum = _pallas_masked_sum(
        _bce_loglik, [low_dim_similarity, high_dim_similarity], (0.5, 0.5),
        max_tile_rows=max_tile_rows)
    kl_sum = _pallas_masked_sum(
        _kl_terms, [means, log_vars], (0.0, 0.0),
        max_tile_rows=max_tile_rows)

    encoder_loss = -bce_ll_sum / jnp.float32(n_sim)   # mean BCE
    kl_divergence = 0.5 * kl_sum
    total_reward = -(encoder_loss + kl_divergence)
    return {"encoder_reward": total_reward}


if __name__ == "__main__":
    key = jax.random.PRNGKey(0)
    k1, k2, k3, k4, k5 = jax.random.split(key, 5)

    B, D = 16, 8            # latent stats (means / log_vars)
    R, C = 44, 128          # similarity matrices (R not a tile multiple -> tail mask)

    means = 0.1 * jax.random.normal(k1, (B, D), dtype=jnp.float32)
    log_vars = 0.1 * jax.random.normal(k2, (B, D), dtype=jnp.float32)
    points = (jax.random.normal(k3, (B, D), dtype=jnp.float32), None)
    low_dim_similarity = jax.nn.sigmoid(jax.random.normal(k4, (R, C), dtype=jnp.float32))
    high_dim_similarity = jax.nn.sigmoid(jax.random.normal(k5, (R, C), dtype=jnp.float32))

    # Small max_tile_rows so tiny test shapes still exercise the multi-block grid,
    # the 2-way parallel outer split, the row-tail mask and the padded grid cell.
    out = reward_calculator_vae_umap(means, log_vars, points,
                                     low_dim_similarity, high_dim_similarity,
                                     max_tile_rows=16)
    reward = jax.block_until_ready(out["encoder_reward"])

    # Pure-JAX reference of the PyTorch forward.
    log_p = jnp.maximum(jnp.log(low_dim_similarity), -100.0)
    log_1mp = jnp.maximum(jnp.log1p(-low_dim_similarity), -100.0)
    ref_bce = -jnp.mean(high_dim_similarity * log_p
                        + (1.0 - high_dim_similarity) * log_1mp)
    ref_kl = 0.5 * jnp.sum(-1.0 - log_vars + means ** 2 + jnp.exp(log_vars))
    ref_reward = -(ref_bce + ref_kl)

    assert jnp.allclose(reward, ref_reward, atol=1e-4, rtol=1e-5), (reward, ref_reward)
    print("KERNEL_OK")
</pallas_src>

<mosaic_0001>
module attributes {stable_mosaic.version = 11 : i64} {
  func.func @kernel(%arg0: i32, %arg1: i32, %arg2: memref<16x128xf32, #tpu.memory_space<vmem>>, %arg3: memref<16x128xf32, #tpu.memory_space<vmem>>, %arg4: memref<8x128xf32, #tpu.memory_space<vmem>>, %arg5: memref<8x128xf32, #tpu.memory_space<vmem>>) attributes {dimension_semantics = [#tpu.dimension_semantics<parallel>, #tpu.dimension_semantics<arbitrary>], iteration_bounds = array<i64: 2, 2>, scalar_prefetch = 0 : i64, scratch_operands = 1 : i64, tpu.core_type = #tpu.core_type<tc>, window_params = [{transform_indices = @transform_0, window_bounds = array<i64: 16, 128>}, {transform_indices = @transform_1, window_bounds = array<i64: 16, 128>}, {transform_indices = @transform_2, window_bounds = array<i64: 8, 128>}]} {
    %c0_i32 = arith.constant 0 : i32
    %0 = arith.cmpi eq, %arg1, %c0_i32 : i32
    %1 = arith.extui %0 : i1 to i32
    %c0_i32_0 = arith.constant 0 : i32
    %2 = arith.cmpi ne, %1, %c0_i32_0 : i32
    scf.if %2 {
      %cst_17 = arith.constant 0.000000e+00 : f32
      %44 = vector.broadcast %cst_17 : f32 to vector<8x128xf32>
      %c0_18 = arith.constant 0 : index
      %c0_19 = arith.constant 0 : index
      %45 = vector.load %arg5[%c0_18, %c0_19] : memref<8x128xf32, #tpu.memory_space<vmem>>, vector<8x128xf32>
      tpu.vector_store %arg5[%c0_18, %c0_19], %44 {strides = array<i32>} : memref<8x128xf32, #tpu.memory_space<vmem>>, vector<8x128xf32>,
    } else {
    }
    %c2_i32 = arith.constant 2 : i32
    %3 = arith.muli %arg0, %c2_i32 : i32
    %4 = arith.addi %3, %arg1 : i32
    %c2_i32_1 = arith.constant 2 : i32
    %5 = arith.minsi %4, %c2_i32_1 : i32
    %c16_i32 = arith.constant 16 : i32
    %6 = arith.muli %5, %c16_i32 : i32
    %7 = tpu.iota {dimensions = array<i32: 0>} : vector<16x128xi32>
    %8 = vector.broadcast %6 : i32 to vector<16x128xi32>
    %9 = arith.addi %8, %7 : vector<16x128xi32>
    %c44_i32 = arith.constant 44 : i32
    %10 = vector.broadcast %c44_i32 : i32 to vector<16x128xi32>
    %11 = arith.cmpi slt, %9, %10 : vector<16x128xi32>
    %c3_i32 = arith.constant 3 : i32
    %12 = arith.cmpi slt, %4, %c3_i32 : i32
    %13 = vector.broadcast %12 : i1 to vector<16x128xi1>
    %14 = arith.andi %11, %13 : vector<16x128xi1>
    %c0 = arith.constant 0 : index
    %c0_2 = arith.constant 0 : index
    %15 = vector.load %arg2[%c0, %c0_2] : memref<16x128xf32, #tpu.memory_space<vmem>>, vector<16x128xf32>
    %cst = arith.constant 5.000000e-01 : f32
    %16 = vector.broadcast %cst : f32 to vector<16x128xf32>
    %17 = arith.select %14, %15, %16 : vector<16x128xi1>, vector<16x128xf32>
    %c0_3 = arith.constant 0 : index
    %c0_4 = arith.constant 0 : index
    %18 = vector.load %arg3[%c0_3, %c0_4] : memref<16x128xf32, #tpu.memory_space<vmem>>, vector<16x128xf32>
    %cst_5 = arith.constant 5.000000e-01 : f32
    %19 = vector.broadcast %cst_5 : f32 to vector<16x128xf32>
    %20 = arith.select %14, %18, %19 : vector<16x128xi1>, vector<16x128xf32>
    %21 = math.log %17 : vector<16x128xf32>
    %cst_6 = arith.constant -1.000000e+02 : f32
    %22 = vector.broadcast %cst_6 : f32 to vector<16x128xf32>
    %23 = arith.maximumf %21, %22 : vector<16x128xf32>
    %cst_7 = arith.constant 0.000000e+00 : f32
    %24 = vector.broadcast %cst_7 : f32 to vector<16x128xf32>
    %25 = arith.subf %24, %17 : vector<16x128xf32>
    %26 = math.log1p %25 : vector<16x128xf32>
    %cst_8 = arith.constant -1.000000e+02 : f32
    %27 = vector.broadcast %cst_8 : f32 to vector<16x128xf32>
    %28 = arith.maximumf %26, %27 : vector<16x128xf32>
    %29 = arith.mulf %20, %23 : vector<16x128xf32>
    %cst_9 = arith.constant 1.000000e+00 : f32
    %30 = vector.broadcast %cst_9 : f32 to vector<16x128xf32>
    %31 = arith.subf %30, %20 : vector<16x128xf32>
    %32 = arith.mulf %31, %28 : vector<16x128xf32>
    %33 = arith.addf %29, %32 : vector<16x128xf32>
    %cst_10 = arith.constant 0.000000e+00 : f32
    %34 = vector.broadcast %cst_10 : f32 to vector<16x128xf32>
    %35 = arith.select %14, %33, %34 : vector<16x128xi1>, vector<16x128xf32>
    %c0_11 = arith.constant 0 : index
    %c0_12 = arith.constant 0 : index
    %36 = vector.load %arg5[%c0_11, %c0_12] : memref<8x128xf32, #tpu.memory_space<vmem>>, vector<8x128xf32>
    %37 = vector.shape_cast %35 : vector<16x128xf32> to vector<2x8x128xf32>
    %cst_13 = arith.constant dense<0.000000e+00> : vector<8x128xf32>
    %38 = vector.multi_reduction <add>, %37, %cst_13 [0] : vector<2x8x128xf32> to vector<8x128xf32>
    %39 = arith.addf %36, %38 : vector<8x128xf32>
    %c0_14 = arith.constant 0 : index
    %c0_15 = arith.constant 0 : index
    %40 = vector.load %arg5[%c0_14, %c0_15] : memref<8x128xf32, #tpu.memory_space<vmem>>, vector<8x128xf32>
    tpu.vector_store %arg5[%c0_14, %c0_15], %39 {strides = array<i32>} : memref<8x128xf32, #tpu.memory_space<vmem>>, vector<8x128xf32>,
    %c1_i32 = arith.constant 1 : i32
    %41 = arith.cmpi eq, %arg1, %c1_i32 : i32
    %42 = arith.extui %41 : i1 to i32
    %c0_i32_16 = arith.constant 0 : i32
    %43 = arith.cmpi ne, %42, %c0_i32_16 : i32
    scf.if %43 {
      %c0_17 = arith.constant 0 : index
      %c0_18 = arith.constant 0 : index
      %44 = vector.load %arg5[%c0_17, %c0_18] : memref<8x128xf32, #tpu.memory_space<vmem>>, vector<8x128xf32>
      %c0_19 = arith.constant 0 : index
      %c0_20 = arith.constant 0 : index
      %45 = vector.load %arg4[%c0_19, %c0_20] : memref<8x128xf32, #tpu.memory_space<vmem>>, vector<8x128xf32>
      tpu.vector_store %arg4[%c0_19, %c0_20], %44 {strides = array<i32>} : memref<8x128xf32, #tpu.memory_space<vmem>>, vector<8x128xf32>,
    } else {
    }
    return
  }
  func.func @transform_0(%arg0: i32, %arg1: i32) -> (i32, i32) {
    %c2_i32 = arith.constant 2 : i32
    %0 = arith.muli %arg0, %c2_i32 : i32
    %1 = arith.addi %0, %arg1 : i32
    %c2_i32_0 = arith.constant 2 : i32
    %2 = arith.minsi %1, %c2_i32_0 : i32
    %c0_i32 = arith.constant 0 : i32
    %c0_i32_1 = arith.constant 0 : i32
    return %2, %c0_i32 : i32, i32
  }
  func.func @transform_1(%arg0: i32, %arg1: i32) -> (i32, i32) {
    %c2_i32 = arith.constant 2 : i32
    %0 = arith.muli %arg0, %c2_i32 : i32
    %1 = arith.addi %0, %arg1 : i32
    %c2_i32_0 = arith.constant 2 : i32
    %2 = arith.minsi %1, %c2_i32_0 : i32
    %c0_i32 = arith.constant 0 : i32
    %c0_i32_1 = arith.constant 0 : i32
    return %2, %c0_i32 : i32, i32
  }
  func.func @transform_2(%arg0: i32, %arg1: i32) -> (i32, i32) {
    %c0_i32 = arith.constant 0 : i32
    %c0_i32_0 = arith.constant 0 : i32
    return %arg0, %c0_i32 : i32, i32
  }
}

</mosaic_0001>

<bundles_post_ra>
// kernel: tpu_custom_call.1
= control target key start
LH: loop header
LB: loop body
LE: loop exit
PB: predicated region body
PF: predicated region fallthrough
CT: control target
= control target key end

     0   :  { %s1130_s0 = inlined_call_operand.hbm [shape: f32[44,128], index: 0, kind: input, shape index: {}]   ;;  %s1131_s1 = inlined_call_operand.hbm [shape: f32[44,128], index: 1, kind: input, shape index: {}]   ;;  %s1132_s2 = inlined_call_operand.hbm [shape: f32[16,128], index: 2, kind: output, shape index: {}]  }
   0x1   :  { %1141 = sst [smem:[#allocation16_spill]] %s1130_s0 }
   0x2   :  { %7 = vsyncpa [#allocation4], 0 }
   0x3   :  { %9 = vsyncpa [#allocation4 + $0x1], 0 }
   0x4   :  { %10 = vsyncpa [#allocation7], 0 }
   0x5   :  { %12 = vsyncpa [#allocation7 + $0x1], 0 }
   0x6   :  { %13 = vsyncpa [#allocation5], 0 }
   0x7   :  { %15 = vsyncpa [#allocation5 + $0x1], 0  ;;  %s803_s9 = smov 0   ;;  %s805_s10 = smov 0  }
   0x8   :  { %s807_s11 = smov 0   ;;  %s809_s12 = smov 0  }
   0x9   :  { %s811_s13 = smov 0   ;;  %s813_s14 = smov 0  }
   0xa   :  { %s815_s15 = smov 0   ;;  %s817_s16 = smov 0  }
   0xb   :  { %s819_s17 = smov 0   ;;  %s821_s18 = smov 0  }
   0xc   :  { %s823_s19 = smov 0  }
   0xd LB: > { %1142 = sst [smem:[#allocation12_spill]] %s772_s17  ;;  %s446_s20 = sadd.s32 4294967295, %s780_s19   ;;  %s780_s19 = sphi %s823_s19, %s21_s19   ;;  %s776_s18 = sphi %s821_s18, %s1166_s18   ;;  %s772_s17 = sphi %s819_s17, %s1165_s17   ;;  %s768_s16 = sphi %s817_s16, %s1164_s16   ;;  %s764_s15 = sphi %s815_s15, %s1163_s15   ;;  %s760_s14 = sphi %s813_s14, %s1172_s14   ;;  %s756_s13 = sphi %s811_s13, %s1171_s13   ;;  %s752_s12 = sphi %s809_s12, %s1170_s12   ;;  %s748_s11 = sphi %s807_s11, %s1169_s11   ;;  %s744_s10 = sphi %s805_s10, %s1168_s10   ;;  %s740_s9 = sphi %s803_s9, %s1167_s9  }
   0xe   : > { %1143 = sst [smem:[#allocation13_spill]] %s776_s18  ;;  %s447_s21 = sadd.s32 4294967294, %s780_s19  }
   0xf   : > { %s30_s22 = sadd.s32 1, %s772_s17  ;;  %s33_s23 = sadd.s32 1, %s776_s18 }
  0x10   : > { %p31_p0 = scmp.ge.s32.totalorder %s30_s22, 2  ;;  %s448_s24 = sshll.u32 %s776_s18, 1 }
  0x11   : > { %s38_s25 = sadd.s32 %s772_s17, %s448_s24  ;;  %s48_s26 = sadd.s32 1, %s760_s14 }
  0x12   : > { %s1174_s22 = smov (%p31_p0, %s30_s22), 0  ;;  %s1176_s23 = smov (!%p31_p0, %s33_s23), %s776_s18 }
  0x13   : > { %1144 = sst [smem:[#allocation14_spill]] %s1174_s22  ;;  %p39_p1 = scmp.lt.s32.totalorder %s38_s25, 2 }
  0x14   : > { %p55_p2 = scmp.ne.s32.totalorder %s760_s14, %s756_s13  ;;  %p35_p3 = scmp.ge.s32.totalorder %s1176_s23, 2 }
  0x15   : > { %p56_p4 = scmp.eq.s32.totalorder %s780_s19, 0  ;;  %s1178_s25 = smov (!%p39_p1, %s38_s25), 2 }
  0x16   : > { %s1180_s23 = smov (%p35_p3, %s1176_s23), 0  ;;  %p61_p6 = scmp.ne.s32.totalorder %s756_s13, %s752_s12 }
  0x17   : > { %1145 = sst [smem:[#allocation15_spill]] %s1180_s23  ;;  %p875_p5 = por %p56_p4, %p55_p2 }
  0x18   : > { %s449_s28 = sshll.u32 %s1180_s23, 1  ;;  %p62_p7 = scmp.eq.s32.totalorder %s446_s20, 0 }
  0x19   : > { %s42_s29 = sadd.s32 %s449_s28, %s1174_s22  ;;  %s105_s30 = ssub.s32 %s776_s18, %s1180_s23 }
  0x1a   : > { %p43_p8 = scmp.lt.s32.totalorder %s42_s29, 2  ;;  %p887_p9 = por %p62_p7, %p61_p6 }
  0x1b   : > { %p106_p10 = scmp.eq.s32.totalorder %s105_s30, 0  ;;  %s108_s4 = sadd.s32 1, %s748_s11 }
  0x1c   : > { %s1147_s3 = scalar_select %p887_p9, 1, 0 }
  0x1d   : > { %s1182_s29 = smov (!%p43_p8, %s42_s29), 2  ;;  %p118_p11 = scmp.ne.s32.totalorder %s748_s11, %s744_s10 }
  0x1e   : > { %s893_s5 = scalar_select %p106_p10, %s748_s11, %s108_s4  }
  0x1f   : > { %s45_s6 = ssub.s32 %s1178_s25, %s1182_s29  ;;  %p119_p13 = scmp.eq.s32.totalorder %s446_s20, 3 }
  0x20   : > { %p46_p12 = scmp.eq.s32.totalorder %s45_s6, 0  ;;  %p124_p0 = scmp.ne.s32.totalorder %s744_s10, %s740_s9 }
  0x21   : > { %p125_p1 = scmp.eq.s32.totalorder %s447_s21, 3  ;;  %p907_p2 = por %p119_p13, %p118_p11 }
  0x22   : > { %s905_s7 = scalar_select %p46_p12, %s760_s14, %s48_s26  }
  0x23   : > { %s1148_s8 = scalar_select %p907_p2, 1, 0 }
  0x24   : > { %p911_p3 = por %p125_p1, %p124_p0  ;;  %p493_p4 = scmp.lt.s32.totalorder %s780_s19, 4 }
  0x25   : > { %s917_s24 = sand.u32 1, %s760_s14   ;;  %s1135_s20 = sshll.u32 %s1178_s25, 8 }
  0x26   : > { %s1149_s12 = scalar_select %p911_p3, 1, 0 }
  0x27   : > { %s1134_s28 = sshll.u32 %s917_s24, 4  ;;  %s1150_s0 = sld [smem:[#allocation16_spill]] }
  0x28   : > { %s149_s30 = scalar_lea.vmem [#allocation3], %s1134_s28  ;;  %p932_p6 = pnand %p493_p4, %p875_p5 }
  0x29   : > { %s160_s4 = sshll.u32 %s149_s30, 4  ;;  %s936_s4 = int_to_ptr.vmem [resolvable:$true] %s160_s4 }
  0x2a   : > { %p596_p8 = pneg %p932_p6 }
  0x2d   : > { %s926_s29 = scalar_lea.hbm %s1150_s0, %s1135_s20  ;;  %s599_s27 = scalar_lea.hbm %s1150_s0, 768 }
  0x2e   : > { %s594_s21 = scalar_lea.hbm %s926_s29, 256  ;;  %p600_p5 = scmp.lt.u32.totalorder %s926_s29, %s1150_s0 }
  0x2f   : > { %p595_p7 = scmp.ne.s32.totalorder %s926_s29, %s594_s21  ;;  %p601_p12 = scmp.lt.u32.totalorder %s599_s27, %s594_s21 }
  0x30   : > { %p603_p0 = scmp.lt.u32.totalorder %s594_s21, %s926_s29 }
  0x31   : > { %p597_p10 = pnand %p596_p8, %p595_p7  ;;  %p602_p13 = por %p601_p12, %p600_p5 }
  0x33   : > { %p598_p11 = pneg %p597_p10  ;;  %p604_p1 = por %p603_p0, %p602_p13 }
  0x35   : > { %p605_p4 = pnand %p604_p1, %p598_p11 }
  0x37   : > { %608 = shalt.err (!%p605_p4)
}
  0x38   : > { %s609_s23 = scalar_lea.vmem %s936_s4, 256  ;;  %s782_s26 = smov [#allocation3]  }
  0x39   : > { %p610_p7 = scmp.ne.s32.totalorder %s936_s4, %s609_s23  ;;  %s614_s30 = sshll.u32 %s782_s26, 4  ;;  %s615_s30 = int_to_ptr.vmem [resolvable:$false] %s614_s30 }
  0x3a   : > { %s616_s20 = scalar_lea.vmem %s615_s30, 512  ;;  %p617_p2 = scmp.lt.s32.totalorder %s936_s4, %s615_s30 }
  0x3b   : > { %p612_p10 = pnand %p610_p7, %p596_p8  ;;  %p618_p5 = scmp.lt.s32.totalorder %s616_s20, %s609_s23 }
  0x3d   : > { %p613_p3 = pneg %p612_p10  ;;  %p619_p12 = por %p618_p5, %p617_p2 }
  0x3f   : > { %p620_p13 = pnand %p619_p12, %p613_p3 }
  0x41   : > { %623 = shalt.err (!%p620_p13)
}
  0x42   : > { %s783_s28 = smov 128   ;;  %s784_s21 = smov 8  }
  0x43   : > { %s1152_s23 = scalar_lea.sflag [#allocation4], %s917_s24  ;;  %p462_p2 = scmp.ge.s32.totalorder %s780_s19, 1 }
  0x44   : > { %485 = dma.hbm_to_vmem [thread:$0]  (!%p932_p6), %s926_s29, 256, %s936_s4, %s1152_s23, %s783_s28, %s783_s28, %s784_s21  }
  0x45   : > { %p193_p3 = scmp.lt.s32.totalorder %s780_s19, 5  ;;  %s1154_s26 = sshll.u32 %s1178_s25, 8 }
  0x46   : > { %s980_s0 = scalar_lea.hbm %s1131_s1, %s1154_s26  ;;  %s1155_s22 = sshll.u32 %s917_s24, 4 }
  0x47   : > { %p971_p11 = pnand %p462_p2, %p193_p3  ;;  %s174_s18 = scalar_lea.vmem [#allocation6], %s1155_s22 }
  0x48   : > { %s185_s17 = sshll.u32 %s174_s18, 4  ;;  %s171_s29 = scalar_lea.sflag [#allocation7], %s917_s24  ;;  %s984_s17 = int_to_ptr.vmem [resolvable:$true] %s185_s17 }
  0x49   : > { %s624_s4 = scalar_lea.hbm %s980_s0, 256  ;;  %s629_s26 = scalar_lea.hbm %s1131_s1, 768 }
  0x4a   : > { %p625_p0 = scmp.ne.s32.totalorder %s980_s0, %s624_s4  ;;  %p630_p7 = scmp.lt.u32.totalorder %s980_s0, %s1131_s1 }
  0x4b   : > { %p631_p10 = scmp.lt.u32.totalorder %s629_s26, %s624_s4  ;;  %p633_p12 = scmp.lt.u32.totalorder %s624_s4, %s980_s0 }
  0x4c   : > { %p627_p1 = pnand %p625_p0, %p596_p8 }
  0x4d   : > { %p632_p5 = por %p631_p10, %p630_p7 }
  0x4e   : > { %p628_p4 = pneg %p627_p1 }
  0x4f   : > { %p634_p13 = por %p633_p12, %p632_p5 }
  0x51   : > { %p635_p2 = pnand %p634_p13, %p628_p4 }
  0x53   : > { %638 = shalt.err (!%p635_p2)
}
  0x54   : > { %s639_s18 = scalar_lea.vmem %s984_s17, 256  ;;  %s785_s22 = smov [#allocation6]  }
  0x55   : > { %p640_p3 = scmp.ne.s32.totalorder %s984_s17, %s639_s18  ;;  %s644_s25 = sshll.u32 %s785_s22, 4  ;;  %s645_s25 = int_to_ptr.vmem [resolvable:$false] %s644_s25 }
  0x56   : > { %s646_s23 = scalar_lea.vmem %s645_s25, 512  ;;  %p647_p9 = scmp.lt.s32.totalorder %s984_s17, %s645_s25 }
  0x57   : > { %p642_p0 = pnand %p640_p3, %p596_p8  ;;  %p648_p7 = scmp.lt.s32.totalorder %s646_s23, %s639_s18 }
  0x59   : > { %p643_p1 = pneg %p642_p0  ;;  %p649_p10 = por %p648_p7, %p647_p9 }
  0x5b   : > { %p650_p5 = pnand %p649_p10, %p643_p1 }
  0x5d   : > { %653 = shalt.err (!%p650_p5)
}
  0x5e   : > { %488 = dma.hbm_to_vmem [thread:$0]  (!%p932_p6), %s980_s0, 256, %s984_s17, %s171_s29, %s783_s28, %s783_s28, %s784_s21  }
  0x5f   : > { %197 = sbr.rel (%p971_p11) target bundleno = 191 (0xbf), region = 28  ;;  %s199_s4 = sand.u32 (!%p971_p11), 1, %s756_s13  }
  0x60   : > { %s463_s26 = sshll.u32 (!%p971_p11), %s199_s4, 4  ;;  %s200_s30 = scalar_lea.sflag (!%p971_p11), [#allocation4], %s199_s4 }
  0x61   : > { %s1018_s20 = scalar_lea.vmem (!%p971_p11), [#allocation3], %s463_s26  ;;  %p1156_p9 = scmp.ne.s32.totalorder (!%p971_p11), %s1147_s3, 0 }
  0x66   : > { %727 = dma.done.wait (%p1156_p9), %s200_s30, 256  }
  0x67   : > { %729 = vsyncadd (%p1156_p9), %s200_s30, 4294967040  ;;  %s209_s24 = scalar_lea.sflag [#allocation7], %s199_s4  ;;  %s1024_s6 = scalar_lea.vmem [#allocation6], %s463_s26 }
  0x68   : > { %731 = dma.done.wait (%p1156_p9), %s209_s24, 256  }
  0x69   : > { %733 = vsyncadd (%p1156_p9), %s209_s24, 4294967040  ;;  %s235_s0 = sand.u32 1, %s744_s10   ;;  %p466_p6 = scmp.ne.s32.totalorder %s764_s15, 0 }
  0x6a   : > { %s1033_s17 = sshll.u32 %s235_s0, 3  ;;  %v786_v0 = vmov (!%p466_p6), 0.0  }
  0x6b   : > { %s237_s28 = scalar_lea.vmem [#allocation8], %s1033_s17  ;;  %251 = sbr.rel (%p466_p6) target bundleno = 114 (0x72), region = 40  ;;  %252 = vst [vmem:[#allocation2] sm:$0xff] (!%p466_p6), %v786_v0 }
  0x72 PF: > { %s467_s21 = sshll.u32 %s768_s16, 1  ;;  %v258_v1 = vlaneseq  ;;  %v272_v8 = vld [vmem:[%s1018_s20] sm:$0xff]  ;;  %v273_v9 = vld [vmem:[%s1018_s20 + $0x8] sm:$0xff]  ;;  %p469_p4 = scmp.ne.s32.totalorder %s764_s15, 1 }
  0x73   : > { %s254_s3 = sadd.s32 %s764_s15, %s467_s21  ;;  %v276_v22 = vld [vmem:[%s1024_s6] sm:$0xff]  ;;  %v277_v26 = vld [vmem:[%s1024_s6 + $0x8] sm:$0xff] }
  0x74   : > { %p255_p8 = scmp.lt.s32.totalorder %s254_s3, 2  ;;  %v259_v2 = vshrl.u32 %v258_v1, 7  ;;  %p266_p11 = scmp.lt.s32.totalorder %s254_s3, 3  ;;  %v318_v54 = vld [vmem:[#allocation2] sm:$0xff] }
  0x76   : > { %s1184_s3 = smov (!%p255_p8, %s254_s3), 2  ;;  %v260_v3 = vadd.s32 8, %v259_v2 }
  0x77   : > { %s267_s27 = scalar_select %p266_p11, 1, 0 }
  0x78   : > { %s468_s29 = sshll.u32 %s1184_s3, 4 }
  0x79   : > { %v261_v4 = vstv %s468_s29  ;;  %v268_v5 = vstv %s267_s27 }
  0x7a   : > { %v262_v6 = vadd.s32 %v261_v4, %v259_v2  ;;  %v263_v7 = vadd.s32 %v261_v4, %v260_v3  ;;  %vm269_vm0 = vcmp.eq.s32.totalorder %v268_v5, 1 }
  0x7c   : > { %vm264_vm1 = vcmp.lt.s32.totalorder %v262_v6, 44  ;;  %vm265_vm2 = vcmp.lt.s32.totalorder %v263_v7, 44 }
  0x7d   : > { %vm1041_vm3 = vmand %vm264_vm1, %vm269_vm0 }
  0x7e   : > { %vm1045_vm4 = vmand %vm265_vm2, %vm269_vm0  ;;  %v274_v12 = vsel %vm1041_vm3, %v272_v8, 0.5  ;;  %v278_v30 = vsel %vm1041_vm3, %v276_v22, 0.5 }
  0x7f   : > { %v275_v13 = vsel %vm1045_vm4, %v273_v9, 0.5  ;;  %586 = vlog2.f32 %v274_v12  ;;  %v286_v14 = vsub.f32 0.0, %v274_v12  ;;  %v279_v33 = vsel %vm1045_vm4, %v277_v26, 0.5 }
  0x80   : > { %588 = vlog2.f32 %v275_v13  ;;  %v287_v15 = vsub.f32 0.0, %v275_v13  ;;  %v310_v40 = vsub.f32 1.0, %v278_v30  ;;  %v311_v42 = vsub.f32 1.0, %v279_v33 }
  0x81   : > { %v288_v16 = vadd.f32 1.0, %v286_v14  ;;  %v291_v18 = vmul.f32 -0.5, %v286_v14  ;;  %v294_v23 = vand.u32 2147483647, %v286_v14 }
  0x82   : > { %v297_v17 = vadd.f32 1.0, %v287_v15  ;;  %v300_v19 = vmul.f32 -0.5, %v287_v15  ;;  %v303_v28 = vand.u32 2147483647, %v287_v15 }
  0x83   : > { %590 = vlog2.f32 %v288_v16  ;;  %v292_v20 = vadd.f32 1.0, %v291_v18  ;;  %vm295_vm5 = vcmp.lt.f32.partialorder %v294_v23, 0.0004427343 }
  0x84   : > { %592 = vlog2.f32 %v297_v17  ;;  %v301_v24 = vadd.f32 1.0, %v300_v19  ;;  %vm304_vm6 = vcmp.lt.f32.partialorder %v303_v28, 0.0004427343 }
  0x85   : > { %v293_v31 = vmul.f32 %v292_v20, %v286_v14 }
  0x86   : > { %v302_v35 = vmul.f32 %v301_v24, %v287_v15 }
  0x89   : > { %v587_v21 = vpop.eup %586 }
  0x8a   : > { %v589_v25 = vpop.eup %588  ;;  %v281_v27 = vmul.f32 0.6931472, %v587_v21 }
  0x8b   : > { %v283_v29 = vmul.f32 0.6931472, %v589_v25 }
  0x8c   : > { %v284_v34 = vmax.f32 %v281_v27, -100.0 }
  0x8d   : > { %v591_v32 = vpop.eup %590  ;;  %v285_v37 = vmax.f32 %v283_v29, -100.0 }
  0x8e   : > { %v593_v36 = vpop.eup %592  ;;  %v290_v38 = vmul.f32 0.6931472, %v591_v32  ;;  %v308_v45 = vmul.f32 %v284_v34, %v278_v30 }
  0x8f   : > { %v299_v39 = vmul.f32 0.6931472, %v593_v36  ;;  %v309_v47 = vmul.f32 %v285_v37, %v279_v33 }
  0x90   : > { %v296_v41 = vsel %vm295_vm5, %v293_v31, %v290_v38 }
  0x91   : > { %v305_v43 = vsel %vm304_vm6, %v302_v35, %v299_v39  ;;  %v306_v44 = vmax.f32 %v296_v41, -100.0 }
  0x92   : > { %v307_v46 = vmax.f32 %v305_v43, -100.0 }
  0x93   : > { %v312_v48 = vmul.f32 %v310_v40, %v306_v44 }
  0x94   : > { %v313_v49 = vmul.f32 %v311_v42, %v307_v46 }
  0x95   : > { %v314_v50 = vadd.f32 %v312_v48, %v308_v45 }
  0x96   : > { %v315_v51 = vadd.f32 %v313_v49, %v309_v47 }
  0x97   : > { %v316_v52 = vsel %vm1041_vm3, %v314_v50, 0.0  ;;  %325 = sbr.rel (%p469_p4) target bundleno = 166 (0xa6), region = 44 }
  0x98   : > { %v317_v53 = vsel %vm1045_vm4, %v315_v51, 0.0 }
  0x99   : > { %v319_v55 = vadd.f32 %v317_v53, %v316_v52 }
  0x9b   : > { %v320_v56 = vadd.f32 %v319_v55, %v318_v54 }
  0x9d   : > { %321 = vst [vmem:[#allocation2] sm:$0xff] %v320_v56 }
  0xa4   : > { %v326_v57 = vld [vmem:[#allocation2] sm:$0xff] }
  0xa5   : > { %327 = vst [vmem:[%s237_s28] sm:$0xff] %v326_v57 }
  0xa6 PF: > { %s471_s18 = sshll.u32 %s768_s16, 7  ;;  %s342_s4 = sshll.u32 %s237_s28, 4  ;;  %s343_s4 = int_to_ptr.vmem [resolvable:$true] %s342_s4 }
  0xa7   : > { %s1070_s23 = scalar_lea.hbm %s1132_s2, %s471_s18  ;;  %s329_s15 = scalar_lea.sflag [#allocation5], %s235_s0 }
  0xa8   : > { %s654_s26 = scalar_lea.vmem %s343_s4, 128  ;;  %p1161_p13 = scmp.ne.s32.totalorder %s1148_s8, 0 }
  0xa9   : > { %p655_p12 = scmp.ne.s32.totalorder %s343_s4, %s654_s26  ;;  %s787_s30 = smov [#allocation8]  }
  0xaa   : > { %s658_s20 = sshll.u32 %s787_s30, 4  ;;  %s659_s20 = int_to_ptr.vmem [resolvable:$false] %s658_s20 }
  0xab   : > { %p656_p2 = pnand %p655_p12, %p1161_p13  ;;  %s660_s24 = scalar_lea.vmem %s659_s20, 256 }
  0xac   : > { %p661_p0 = scmp.lt.s32.totalorder %s343_s4, %s659_s20  ;;  %p662_p1 = scmp.lt.s32.totalorder %s660_s24, %s654_s26 }
  0xad   : > { %p657_p3 = pneg %p656_p2 }
  0xae   : > { %p663_p7 = por %p662_p1, %p661_p0 }
  0xb0   : > { %p664_p10 = pnand %p663_p7, %p657_p3 }
  0xb2   : > { %667 = shalt.err (!%p664_p10)
}
  0xb3   : > { %s668_s16 = scalar_lea.hbm %s1070_s23, 128  ;;  %s672_s17 = scalar_lea.hbm %s1132_s2, 256 }
  0xb4   : > { %p669_p5 = scmp.ne.s32.totalorder %s1070_s23, %s668_s16  ;;  %p673_p8 = scmp.lt.u32.totalorder %s1070_s23, %s1132_s2 }
  0xb5   : > { %p674_p11 = scmp.lt.u32.totalorder %s672_s17, %s668_s16  ;;  %p676_p12 = scmp.lt.u32.totalorder %s668_s16, %s1070_s23 }
  0xb6   : > { %p670_p9 = pnand %p669_p5, %p1161_p13 }
  0xb7   : > { %p675_p4 = por %p674_p11, %p673_p8 }
  0xb8   : > { %p671_p6 = pneg %p670_p9 }
  0xb9   : > { %p677_p2 = por %p676_p12, %p675_p4 }
  0xbb   : > { %p678_p3 = pnand %p677_p2, %p671_p6 }
  0xbd   : > { %681 = shalt.err (!%p678_p3)
}
  0xbe   : > { %480 = dma.vmem_to_hbm [thread:$0]  (%p1161_p13), %s343_s4, 128, %s1070_s23, %s329_s15  }
  0xbf PF: > { %p494_p0 = scmp.ge.s32.totalorder %s780_s19, 2  ;;  %s354_s3 = sand.u32 1, %s740_s9  }
  0xc0   : > { %p1162_p1 = scmp.ne.s32.totalorder %s1149_s12, 0  ;;  %s355_s27 = scalar_lea.sflag [#allocation5], %s354_s3 }
  0xc2   : > { %p490_p7 = pnand %p494_p0, %p1162_p1 }
  0xc4   : > { %735 = dma.done.wait (!%p490_p7), %s355_s27, 128  }
  0xc5   : > { %737 = vsyncadd (!%p490_p7), %s355_s27, 4294967168  ;;  %s21_s19 = sadd.s32 1, %s780_s19   ;;  %s1163_s15 = sld [smem:[#allocation12_spill]] }
  0xc6   : > { %p18_p10 = scmp.ge.s32.totalorder %s21_s19, 6   ;;  %s1164_s16 = sld [smem:[#allocation13_spill]] }
  0xc7   : > { %s1165_s17 = sld [smem:[#allocation14_spill]]  ;;  %s1166_s18 = sld [smem:[#allocation15_spill]] }
  0xc8   : > { %s1167_s9 = smov %s744_s10  ;;  %s1168_s10 = smov %s748_s11 }
  0xc9   : > { %s1169_s11 = smov %s893_s5  ;;  %s1170_s12 = smov %s756_s13 }
  0xca   : > { %s1171_s13 = smov %s760_s14  ;;  %s1172_s14 = smov %s905_s7 }
  0xcb   :  { %20 = sbr.rel (!%p18_p10) target bundleno = 13 (0xd), region = 94 }
  0xd2   :  { %360 = vsyncpa [#allocation4], 1 }
  0xd3   :  { %362 = vsyncpa [#allocation4 + $0x1], 1 }
  0xd4   :  { %363 = vsyncpa [#allocation7], 1 }
  0xd5   :  { %365 = vsyncpa [#allocation7 + $0x1], 1 }
  0xd6   :  { %366 = vsyncpa [#allocation5], 1 }
  0xd7   :  { %368 = vsyncpa [#allocation5 + $0x1], 1 }

</bundles_post_ra>
